<compile_context>
chip_gen: v7x
topology: tpu7x:2x2x1
jax: 0.10.0
libtpu: 0.0.40
codegen_flags: <defaults>
</compile_context>

<pallas_src>
import functools

import jax
import jax.numpy as jnp
from jax import lax
from jax.experimental import pallas as pl
from jax.experimental.pallas import tpu as pltpu

_EPS = 1e-8  # matches torch.nn.functional.cosine_similarity clamp on the norm


def _l2_normalize_f32(x):
    # x: f32 [..., D].  Per-row inverse norm (shape [..., 1]) then a broadcast
    # multiply: 1 sqrt + 1 divide per row on the EUP instead of D divides.
    norm = jnp.sqrt(jnp.sum(x * x, axis=-1, keepdims=True))
    inv = 1.0 / jnp.maximum(norm, _EPS)
    return x * inv


def _score_cosine_kernel(enroll_ref, test_ref, out_ref, *, averaging):
    # enroll_ref: [E_T, S, D]   test_ref: [T_T, D]   out_ref: [E_T, T_T]
    e = enroll_ref[...]
    t = test_ref[...]
    e_f32 = e.astype(jnp.float32)

    if averaging == "embeddings":
        # Mean over sessions, then normalize.
        e_vec = _l2_normalize_f32(jnp.mean(e_f32, axis=1))           # [E_T, D]
    else:  # 'scores'
        # Normalize each session, then mean (exact collapse of score averaging).
        e_vec = jnp.mean(_l2_normalize_f32(e_f32), axis=1)           # [E_T, D]

    t_vec = _l2_normalize_f32(t.astype(jnp.float32))                 # [T_T, D]

    # Feed the MXU in the input dtype (no f32 upcast of bf16 operands) and
    # accumulate in f32.  Contracting dim 1 of both operands lets the MXU
    # consume the RHS transposed -- no XLU transpose / extra VMEM copy of test.
    scores = lax.dot_general(
        e_vec.astype(e.dtype),
        t_vec.astype(t.dtype),
        dimension_numbers=(((1,), (1,)), ((), ())),
        preferred_element_type=jnp.float32,
    )
    out_ref[...] = scores.astype(out_ref.dtype)


def _pick_e_tile(E, S, D, itemsize):
    # E rides the output sublane axis: full extent, or a multiple of 8 when
    # tiled.  Keep the (E_T, S, D) enroll slab around <=4 MiB so double
    # buffering fits every generation's scoped VMEM limit.
    if E <= 8:
        return E
    budget_rows = max(8, (4 << 20) // max(1, S * D * itemsize))
    e_t = min(E, 256, budget_rows)
    if e_t >= E:
        return E
    return max(8, (e_t // 8) * 8)


def _pick_t_tile(T):
    # T rides the output lane axis: full extent, or a lane-dense multiple of
    # 128 (512) when tiled.  Ragged last blocks are padded/masked by Pallas.
    return T if T <= 512 else 512


@functools.partial(jax.jit, static_argnames=("averaging",))
def _score_cosine_impl(enroll, test, averaging):
    E, S, D = enroll.shape
    T, _ = test.shape

    e_t = _pick_e_tile(E, S, D, enroll.dtype.itemsize)
    t_t = _pick_t_tile(T)
    grid = (pl.cdiv(E, e_t), pl.cdiv(T, t_t))

    kernel = functools.partial(_score_cosine_kernel, averaging=averaging)
    return pl.pallas_call(
        kernel,
        out_shape=jax.ShapeDtypeStruct((E, T), jnp.float32),
        grid=grid,
        in_specs=[
            pl.BlockSpec((e_t, S, D), lambda i, j: (i, 0, 0)),
            pl.BlockSpec((t_t, D), lambda i, j: (j, 0)),
        ],
        out_specs=pl.BlockSpec((e_t, t_t), lambda i, j: (i, j)),
        compiler_params=pltpu.CompilerParams(
            dimension_semantics=("parallel", "parallel"),
            vmem_limit_bytes=48 * 1024 * 1024,
        ),
    )(enroll, test)


class ScoreCosine:
    """JAX/Pallas port of the PyTorch ScoreCosine module."""

    def __init__(self, averaging):
        assert averaging in ["embeddings", "scores"]
        self.averaging = averaging

    def __call__(self, enroll, test):
        if isinstance(enroll, (tuple, list)):
            enroll, _n = enroll  # n is unused, as in the reference forward()
        return _score_cosine_impl(enroll, test, self.averaging)


def _reference(enroll, test, averaging):
    # Pure-JAX reference mirroring the un-collapsed torch semantics.
    def norm(x):
        n = jnp.sqrt(jnp.sum(x * x, axis=-1, keepdims=True))
        return x / jnp.maximum(n, _EPS)

    e32 = enroll.astype(jnp.float32)
    t32 = test.astype(jnp.float32)
    if averaging == "embeddings":
        return norm(jnp.mean(e32, axis=1)) @ norm(t32).T
    per_session = jnp.einsum("esd,td->est", norm(e32), norm(t32))
    return jnp.mean(per_session, axis=1)


if __name__ == "__main__":
    key = jax.random.PRNGKey(0)
    k1, k2 = jax.random.split(key)

    E, S, D, T = 8, 4, 32, 8
    enroll = jax.random.normal(k1, (E, S, D), dtype=jnp.float32)
    test = jax.random.normal(k2, (T, D), dtype=jnp.float32)

    ok = True
    for averaging in ("embeddings", "scores"):
        scorer = ScoreCosine(averaging)
        # Exercise the (enroll, n) tuple path too.
        scores = scorer((enroll, jnp.full((E,), S, jnp.int32)), test)
        scores = jax.block_until_ready(scores)
        ref = _reference(enroll, test, averaging)
        if not jnp.allclose(scores, ref, atol=1e-5, rtol=1e-5):
            ok = False
            print(f"MISMATCH in mode {averaging}: "
                  f"max err {jnp.max(jnp.abs(scores - ref))}")

    if ok:
        print("KERNEL_OK")
</pallas_src>

<mosaic_0001>
module attributes {stable_mosaic.version = 11 : i64} {
  func.func @_score_cosine_kernel(%arg0: i32, %arg1: i32, %arg2: memref<8x4x32xf32, #tpu.memory_space<vmem>>, %arg3: memref<8x32xf32, #tpu.memory_space<vmem>>, %arg4: memref<8x8xf32, #tpu.memory_space<vmem>>) attributes {dimension_semantics = [#tpu.dimension_semantics<parallel>, #tpu.dimension_semantics<parallel>], iteration_bounds = array<i64: 1, 1>, scalar_prefetch = 0 : i64, scratch_operands = 0 : i64, tpu.core_type = #tpu.core_type<tc>, window_params = [{transform_indices = @transform_0, window_bounds = array<i64: 8, 4, 32>}, {transform_indices = @transform_1, window_bounds = array<i64: 8, 32>}, {transform_indices = @transform_2, window_bounds = array<i64: 8, 8>}]} {
    %c0 = arith.constant 0 : index
    %c0_0 = arith.constant 0 : index
    %c0_1 = arith.constant 0 : index
    %0 = vector.load %arg2[%c0, %c0_0, %c0_1] : memref<8x4x32xf32, #tpu.memory_space<vmem>>, vector<8x4x32xf32>
    %c0_2 = arith.constant 0 : index
    %c0_3 = arith.constant 0 : index
    %1 = vector.load %arg3[%c0_2, %c0_3] : memref<8x32xf32, #tpu.memory_space<vmem>>, vector<8x32xf32>
    %cst = arith.constant dense<0.000000e+00> : vector<8x32xf32>
    %2 = vector.multi_reduction <add>, %0, %cst [1] : vector<8x4x32xf32> to vector<8x32xf32>
    %cst_4 = arith.constant 4.000000e+00 : f32
    %3 = vector.broadcast %cst_4 : f32 to vector<8x32xf32>
    %4 = arith.divf %2, %3 : vector<8x32xf32>
    %5 = arith.mulf %4, %4 : vector<8x32xf32>
    %cst_5 = arith.constant dense<0.000000e+00> : vector<8xf32>
    %6 = vector.multi_reduction <add>, %5, %cst_5 [1] : vector<8x32xf32> to vector<8xf32>
    %7 = vector.shape_cast %6 : vector<8xf32> to vector<8x1xf32>
    %8 = math.sqrt %7 : vector<8x1xf32>
    %cst_6 = arith.constant 9.99999993E-9 : f32
    %9 = vector.broadcast %cst_6 : f32 to vector<8x1xf32>
    %10 = arith.maximumf %8, %9 : vector<8x1xf32>
    %cst_7 = arith.constant 1.000000e+00 : f32
    %11 = vector.broadcast %cst_7 : f32 to vector<8x1xf32>
    %12 = arith.divf %11, %10 : vector<8x1xf32>
    %13 = vector.broadcast %12 : vector<8x1xf32> to vector<8x32xf32>
    %14 = arith.mulf %4, %13 : vector<8x32xf32>
    %15 = arith.mulf %1, %1 : vector<8x32xf32>
    %cst_8 = arith.constant dense<0.000000e+00> : vector<8xf32>
    %16 = vector.multi_reduction <add>, %15, %cst_8 [1] : vector<8x32xf32> to vector<8xf32>
    %17 = vector.shape_cast %16 : vector<8xf32> to vector<8x1xf32>
    %18 = math.sqrt %17 : vector<8x1xf32>
    %cst_9 = arith.constant 9.99999993E-9 : f32
    %19 = vector.broadcast %cst_9 : f32 to vector<8x1xf32>
    %20 = arith.maximumf %18, %19 : vector<8x1xf32>
    %cst_10 = arith.constant 1.000000e+00 : f32
    %21 = vector.broadcast %cst_10 : f32 to vector<8x1xf32>
    %22 = arith.divf %21, %20 : vector<8x1xf32>
    %23 = vector.broadcast %22 : vector<8x1xf32> to vector<8x32xf32>
    %24 = arith.mulf %1, %23 : vector<8x32xf32>
    %cst_11 = arith.constant dense<0.000000e+00> : vector<8x8xf32>
    %25 = tpu.matmul %14, %24, %cst_11 {dimension_numbers = #tpu.dot_dimension_numbers<[1], [1], [0], [0], [0, 0, 1, 0], [], []>} : vector<8x32xf32>, vector<8x32xf32>, vector<8x8xf32> -> vector<8x8xf32>
    %c0_12 = arith.constant 0 : index
    %c0_13 = arith.constant 0 : index
    %26 = vector.load %arg4[%c0_12, %c0_13] : memref<8x8xf32, #tpu.memory_space<vmem>>, vector<8x8xf32>
    tpu.vector_store %arg4[%c0_12, %c0_13], %25 {strides = array<i32>} : memref<8x8xf32, #tpu.memory_space<vmem>>, vector<8x8xf32>,
    return
  }
  func.func @transform_0(%arg0: i32, %arg1: i32) -> (i32, i32, i32) {
    %c0_i32 = arith.constant 0 : i32
    %c0_i32_0 = arith.constant 0 : i32
    %c0_i32_1 = arith.constant 0 : i32
    return %arg0, %c0_i32, %c0_i32_0 : i32, i32, i32
  }
  func.func @transform_1(%arg0: i32, %arg1: i32) -> (i32, i32) {
    %c0_i32 = arith.constant 0 : i32
    %c0_i32_0 = arith.constant 0 : i32
    return %arg1, %c0_i32 : i32, i32
  }
  func.func @transform_2(%arg0: i32, %arg1: i32) -> (i32, i32) {
    %c0_i32 = arith.constant 0 : i32
    return %arg0, %arg1 : i32, i32
  }
}

</mosaic_0001>

<bundles_post_ra>
// kernel: _score_cosine_impl.1
= control target key start
LH: loop header
LB: loop body
LE: loop exit
PB: predicated region body
PF: predicated region fallthrough
CT: control target
= control target key end

     0   :  { %7 = vsyncpa [#allocation3], 0  ;;  %s532_s0 = inlined_call_operand.hbm [shape: f32[8,4,32], index: 0, kind: input, shape index: {}]   ;;  %s533_s1 = inlined_call_operand.hbm [shape: f32[8,32], index: 1, kind: input, shape index: {}]   ;;  %s534_s2 = inlined_call_operand.hbm [shape: f32[8,8], index: 2, kind: output, shape index: {}]  }
   0x1   :  { %8 = vsyncpa [#allocation6], 0 }
   0x2   :  { %9 = vsyncpa [#allocation4], 0  ;;  %s408_s9 = smov [#allocation2]   ;;  %s336_s13 = scalar_lea.hbm %s532_s0, 512 }
   0x3   :  { %s15_s10 = sshll.u32 %s408_s9, 4  ;;  %p337_p0 = scmp.ne.s32.totalorder %s532_s0, %s336_s13  ;;  %s16_s10 = int_to_ptr.vmem [resolvable:$true] %s15_s10 }
   0x4   :  { %p340_p1 = scmp.lt.u32.totalorder %s336_s13, %s532_s0 }
   0x6   :  { %p342_p2 = pnand %p340_p1, %p337_p0 }
   0x8   :  { %345 = shalt.err (!%p342_p2)
}
   0x9   :  { %s346_s18 = scalar_lea.vmem %s16_s10, 512  ;;  %p351_p4 = scmp.lt.s32.totalorder %s16_s10, %s16_s10 }
   0xa   :  { %p347_p3 = scmp.ne.s32.totalorder %s16_s10, %s346_s18  ;;  %p352_p5 = scmp.lt.s32.totalorder %s346_s18, %s346_s18 }
   0xc   :  { %p353_p6 = por %p352_p5, %p351_p4 }
   0xe   :  { %p354_p7 = pnand %p353_p6, %p347_p3 }
  0x10   :  { %357 = shalt.err (!%p354_p7)
}
  0x11   :  { %s409_s19 = smov 64   ;;  %s410_s20 = smov 4  }
  0x12   :  { %21 = dma.hbm_to_vmem [thread:$0]  %s532_s0, 512, %s16_s10, [#allocation3], %s409_s19, %s409_s19, %s410_s20  }
  0x13   :  { %s411_s23 = smov [#allocation5]   ;;  %s358_s27 = scalar_lea.hbm %s533_s1, 128 }
  0x14   :  { %s28_s24 = sshll.u32 %s411_s23, 4  ;;  %p359_p8 = scmp.ne.s32.totalorder %s533_s1, %s358_s27  ;;  %s29_s24 = int_to_ptr.vmem [resolvable:$true] %s28_s24 }
  0x15   :  { %p362_p9 = scmp.lt.u32.totalorder %s358_s27, %s533_s1 }
  0x17   :  { %p364_p10 = pnand %p362_p9, %p359_p8 }
  0x19   :  { %367 = shalt.err (!%p364_p10)
}
  0x1a   :  { %s368_s4 = scalar_lea.vmem %s29_s24, 128  ;;  %p373_p12 = scmp.lt.s32.totalorder %s29_s24, %s29_s24 }
  0x1b   :  { %p369_p11 = scmp.ne.s32.totalorder %s29_s24, %s368_s4  ;;  %p374_p13 = scmp.lt.s32.totalorder %s368_s4, %s368_s4 }
  0x1d   :  { %p375_p0 = por %p374_p13, %p373_p12 }
  0x1f   :  { %p376_p1 = pnand %p375_p0, %p369_p11 }
  0x21   :  { %379 = shalt.err (!%p376_p1)
}
  0x22   :  { %31 = dma.hbm_to_vmem [thread:$0]  %s533_s1, 128, %s29_s24, [#allocation6]  }
  0x23   :  { %402 = dma.done.wait [#allocation3], 512  }
  0x24   :  { %403 = vsyncadd [#allocation3], 4294966784 }
  0x25   :  { %404 = dma.done.wait [#allocation6], 128  }
  0x26   :  { %405 = vsyncadd [#allocation6], 4294967168  ;;  %vm47_vm0 = vcmask 257024   ;;  %v38_v0 = vld [vmem:[#allocation2] sm:$0xf]  ;;  %vm129_vm1 = vcmask 1041409  }
  0x27   :  { %v39_v1 = vld [vmem:[#allocation2 + $0x4] sm:$0xf]  ;;  %v40_v2 = vld [vmem:[#allocation2 + $0x8] sm:$0xf]  ;;  %v41_v3 = vld [vmem:[#allocation2 + $0xc] sm:$0xf] }
  0x28   :  { %v42_v4 = vld [vmem:[#allocation2 + $0x10] sm:$0xf]  ;;  %v43_v5 = vld [vmem:[#allocation2 + $0x14] sm:$0xf]  ;;  %v44_v6 = vld [vmem:[#allocation2 + $0x18] sm:$0xf] }
  0x29   :  { %v48_v7 = vsel %vm47_vm0, %v38_v0, 0.0  ;;  %v55_v8 = vsel %vm47_vm0, %v39_v1, 0.0  ;;  %v45_v9 = vld [vmem:[#allocation2 + $0x1c] sm:$0xf]  ;;  %v62_v12 = vsel %vm47_vm0, %v40_v2, 0.0  ;;  %v69_v13 = vsel %vm47_vm0, %v41_v3, 0.0 }
  0x2a   :  { %v49_v10 = vrot.slane %v48_v7, 4  ;;  %v56_v11 = vrot.slane %v55_v8, 4  ;;  %v63_v14 = vrot.slane %v62_v12, 4  ;;  %v70_v15 = vrot.slane %v69_v13, 4  ;;  %s414_s1 = smov [#allocation7]  }
  0x2b   :  { %v76_v16 = vsel %vm47_vm0, %v42_v4, 0.0  ;;  %v83_v17 = vsel %vm47_vm0, %v43_v5, 0.0  ;;  %v90_v24 = vsel %vm47_vm0, %v44_v6, 0.0  ;;  %v97_v25 = vsel %vm47_vm0, %v45_v9, 0.0  ;;  %s302_s6 = sshll.u32 %s414_s1, 4  ;;  %s303_s6 = int_to_ptr.vmem [resolvable:$true] %s302_s6 }
  0x2c   :  { %v50_v18 = vadd.f32 %v49_v10, %v48_v7  ;;  %v57_v19 = vadd.f32 %v56_v11, %v55_v8  ;;  %v77_v20 = vrot.slane %v76_v16, 4  ;;  %v84_v21 = vrot.slane %v83_v17, 4  ;;  %s380_s7 = scalar_lea.vmem %s303_s6, 128  ;;  %p385_p3 = scmp.lt.s32.totalorder %s303_s6, %s303_s6 }
  0x2d   :  { %v64_v22 = vadd.f32 %v63_v14, %v62_v12  ;;  %v71_v23 = vadd.f32 %v70_v15, %v69_v13  ;;  %v91_v32 = vrot.slane %v90_v24, 4  ;;  %v98_v33 = vrot.slane %v97_v25, 4  ;;  %p381_p2 = scmp.ne.s32.totalorder %s303_s6, %s380_s7  ;;  %p386_p4 = scmp.lt.s32.totalorder %s380_s7, %s380_s7 }
  0x2e   :  { %v51_v26 = vrot.slane %v50_v18, 2  ;;  %v58_v27 = vrot.slane %v57_v19, 2  ;;  %v78_v28 = vadd.f32 %v77_v20, %v76_v16  ;;  %v85_v29 = vadd.f32 %v84_v21, %v83_v17  ;;  %v46_v17 = vld [vmem:[#allocation5] sm:$0xff] }
  0x2f   :  { %v65_v30 = vrot.slane %v64_v22, 2  ;;  %v72_v31 = vrot.slane %v71_v23, 2  ;;  %vm131_vm2 = vcmask 1042434   ;;  %v92_v40 = vadd.f32 %v91_v32, %v90_v24  ;;  %p387_p5 = por %p386_p4, %p385_p3 }
  0x30   :  { %v52_v34 = vadd.f32 %v51_v26, %v50_v18  ;;  %v59_v35 = vadd.f32 %v58_v27, %v57_v19  ;;  %v79_v36 = vrot.slane %v78_v28, 2  ;;  %v86_v37 = vrot.slane %v85_v29, 2 }
  0x31   :  { %v66_v38 = vadd.f32 %v65_v30, %v64_v22  ;;  %v73_v39 = vadd.f32 %v72_v31, %v71_v23  ;;  %v99_v41 = vadd.f32 %v98_v33, %v97_v25  ;;  %vm133_vm3 = vcmask 1043459   ;;  %p388_p6 = pnand %p387_p5, %p381_p2 }
  0x32   :  { %v53_v42 = vrot.slane %v52_v34, 1  ;;  %v60_v43 = vrot.slane %v59_v35, 1  ;;  %v80_v44 = vadd.f32 %v79_v36, %v78_v28  ;;  %v87_v45 = vadd.f32 %v86_v37, %v85_v29 }
  0x33   :  { %v67_v46 = vrot.slane %v66_v38, 1  ;;  %v74_v47 = vrot.slane %v73_v39, 1  ;;  %v93_v48 = vrot.slane %v92_v40, 2  ;;  %v100_v49 = vrot.slane %v99_v41, 2 }
  0x34   :  { %v54_v50 = vadd.f32 %v53_v42, %v52_v34  ;;  %v61_v51 = vadd.f32 %v60_v43, %v59_v35  ;;  %v81_v52 = vrot.slane %v80_v44, 1  ;;  %v88_v53 = vrot.slane %v87_v45, 1 }
  0x35   :  { %v68_v54 = vadd.f32 %v67_v46, %v66_v38  ;;  %v75_v55 = vadd.f32 %v74_v47, %v73_v39  ;;  %v94_v56 = vadd.f32 %v93_v48, %v92_v40  ;;  %v101_v57 = vadd.f32 %v100_v49, %v99_v41 }
  0x36   :  { %v82_v58 = vadd.f32 %v81_v52, %v80_v44  ;;  %v89_v59 = vadd.f32 %v88_v53, %v87_v45  ;;  %v462_v60 = vmul.f32 0.25, %v54_v50  ;;  %v464_v61 = vmul.f32 0.25, %v61_v51 }
  0x37   :  { %v95_v62 = vrot.slane %v94_v56, 1  ;;  %v102_v63 = vrot.slane %v101_v57, 1  ;;  %v466_v0 = vmul.f32 0.25, %v68_v54  ;;  %v468_v1 = vmul.f32 0.25, %v75_v55 }
  0x38   :  { %v470_v2 = vmul.f32 0.25, %v82_v58  ;;  %v472_v3 = vmul.f32 0.25, %v89_v59  ;;  %v113_v4 = vmul.f32 %v462_v60, %v462_v60  ;;  %v114_v5 = vmul.f32 %v464_v61, %v464_v61 }
  0x39   :  { %v96_v6 = vadd.f32 %v95_v62, %v94_v56  ;;  %v103_v7 = vadd.f32 %v102_v63, %v101_v57  ;;  %v115_v8 = vmul.f32 %v466_v0, %v466_v0  ;;  %v116_v9 = vmul.f32 %v468_v1, %v468_v1 }
  0x3a   :  { %v117_v10 = vmul.f32 %v470_v2, %v470_v2  ;;  %v118_v11 = vmul.f32 %v472_v3, %v472_v3  ;;  %v130_v12 = vsel %vm129_vm1, %v114_v5, %v113_v4  ;;  %vm135_vm4 = vcmask 1044484  }
  0x3b   :  { %v487_v13 = vmul.f32 0.25, %v96_v6  ;;  %v489_v14 = vmul.f32 0.25, %v103_v7  ;;  %v132_v15 = vsel %vm131_vm2, %v115_v8, %v130_v12  ;;  %vm137_vm5 = vcmask 1045509  }
  0x3c   :  { %v134_v16 = vsel %vm133_vm3, %v116_v9, %v132_v15  ;;  %vm139_vm6 = vcmask 1046534   ;;  %vm141_vm7 = vcmask 1047559   ;;  %vm144_vm8 = vcmask 261120  }
  0x3d   :  { %v119_v18 = vmul.f32 %v487_v13, %v487_v13  ;;  %v120_v19 = vmul.f32 %v489_v14, %v489_v14  ;;  %v136_v20 = vsel %vm135_vm4, %v117_v10, %v134_v16  ;;  %v182_v23 = vmul.f32 %v46_v17, %v46_v17 }
  0x3e   :  { %v138_v21 = vsel %vm137_vm5, %v118_v11, %v136_v20  ;;  %v412_v27 = vmov 0.0   ;;  %vm413_vm9 = vmmov 0   ;;  %vm294_vm14 = vcmask 64512  }
  0x3f   :  { %v140_v22 = vsel %vm139_vm6, %v119_v18, %v138_v21  ;;  %v183_v26 = vsel %vm144_vm8, %v182_v23, 0.0  ;;  %316 = vmatprep.subr.mxu0 %v412_v27  ;;  %318 = vmatprep.mubr.msk.f32.mxu0 %vm413_vm9, %v412_v27 }
  0x40   :  { %v142_v24 = vsel %vm141_vm7, %v120_v19, %v140_v22 }
  0x41   :  { %v145_v25 = vsel %vm144_vm8, %v142_v24, 0.0 }
  0x42   :  { %146 = vadd.xlane.f32.xlu0 %v145_v25 }
  0x46   :  { %184 = vadd.xlane.f32.xlu0 %v183_v26 }
  0xcf   :  { %v147_v28 = vpop.xlane.xlu0 %146 }
  0xd0   :  { %328 = vrsqrt.f32 %v147_v28  ;;  %vm150_vm10 = vcmp.eq.f32.partialorder %v147_v28, inf  ;;  %v153_v32 = vand.u32 2147483648, %v147_v28  ;;  %vm152_vm11 = vcmp.eq.f32.partialorder %v147_v28, 0.0 }
  0xd3   :  { %v185_v29 = vpop.xlane.xlu0 %184 }
  0xd4   :  { %330 = vrsqrt.f32 %v185_v29  ;;  %vm188_vm12 = vcmp.eq.f32.partialorder %v185_v29, inf  ;;  %v191_v38 = vand.u32 2147483648, %v185_v29  ;;  %vm190_vm13 = vcmp.eq.f32.partialorder %v185_v29, 0.0 }
  0xda   :  { %v329_v30 = vpop.eup %328 }
  0xdb   :  { %v149_v31 = vmul.f32 %v329_v30, %v147_v28 }
  0xdd   :  { %v151_v33 = vsel %vm150_vm10, %v147_v28, %v149_v31 }
  0xde   :  { %v331_v34 = vpop.eup %330  ;;  %v154_v35 = vsel %vm152_vm11, %v153_v32, %v151_v33 }
  0xdf   :  { %v155_v36 = vmax.f32 %v154_v35, 1e-08  ;;  %v187_v37 = vmul.f32 %v331_v34, %v185_v29 }
  0xe1   :  { %332 = vrcp.f32 %v155_v36  ;;  %v189_v39 = vsel %vm188_vm12, %v185_v29, %v187_v37 }
  0xe2   :  { %v192_v40 = vsel %vm190_vm13, %v191_v38, %v189_v39 }
  0xe3   :  { %v193_v41 = vmax.f32 %v192_v40, 1e-08 }
  0xe5   :  { %334 = vrcp.f32 %v193_v41 }
  0xeb   :  { %v333_v42 = vpop.eup %332 }
  0xec   :  { %v159_v43 = vrot.slane %v333_v42, 1  ;;  %v160_v44 = vrot.slane %v333_v42, 2  ;;  %v161_v45 = vrot.slane %v333_v42, 3  ;;  %v162_v46 = vrot.slane %v333_v42, 4 }
  0xed   :  { %v163_v47 = vrot.slane %v333_v42, 5  ;;  %v164_v48 = vrot.slane %v333_v42, 6  ;;  %v165_v49 = vrot.slane %v333_v42, 7  ;;  %v174_v54 = vmul.f32 %v333_v42, %v462_v60 }
  0xee   :  { %v175_v50 = vmul.f32 %v159_v43, %v464_v61  ;;  %v176_v51 = vmul.f32 %v160_v44, %v466_v0  ;;  %v177_v52 = vmul.f32 %v161_v45, %v468_v1  ;;  %v178_v55 = vmul.f32 %v162_v46, %v470_v2 }
  0xef   :  { %v335_v53 = vpop.eup %334  ;;  %v179_v57 = vmul.f32 %v163_v47, %v472_v3  ;;  %v180_v62 = vmul.f32 %v164_v48, %v487_v13  ;;  %v181_v61 = vmul.f32 %v165_v49, %v489_v14 }
  0xf0   :  { %v196_v56 = vmul.f32 %v335_v53, %v46_v17  ;;  %v205_v58 = vrot.slane %v175_v50, 7  ;;  %v207_v59 = vrot.slane %v176_v51, 6  ;;  %v209_v0 = vrot.slane %v177_v52, 5 }
  0xf1   :  { %v211_v4 = vrot.slane %v178_v55, 4  ;;  %v213_v2 = vrot.slane %v179_v57, 3  ;;  %v215_v3 = vrot.slane %v180_v62, 2  ;;  %v217_v7 = vrot.slane %v181_v61, 1 }
  0xf2   :  { %317 = vmatpush3.xpose.msk.msra.mxu0 %vm144_vm8, %v196_v56  ;;  %v206_v63 = vsel %vm129_vm1, %v205_v58, %v174_v54 }
  0xf3   :  { %v208_v1 = vsel %vm131_vm2, %v207_v59, %v206_v63 }
  0xf4   :  { %v210_v60 = vsel %vm133_vm3, %v209_v0, %v208_v1 }
  0xf5   :  { %v212_v5 = vsel %vm135_vm4, %v211_v4, %v210_v60 }
  0xf6   :  { %v214_v6 = vsel %vm137_vm5, %v213_v2, %v212_v5 }
  0xf7   :  { %v216_v8 = vsel %vm139_vm6, %v215_v3, %v214_v6 }
  0xf8   :  { %v218_v9 = vsel %vm141_vm7, %v217_v7, %v216_v8 }
  0xf9   :  { %319 = vmatmul.mubr.msk.f32.vlgmr.msra.gmra.mrb[0].mxu0 %vm144_vm8, %v218_v9 }
 0x1cc   :  { %v290_v10 = vpop.f32.mrb[0].mxu0 }
 0x1cd   :  { %v320_v11 = vpop.f32.mrb[1].mxu0  ;;  %295 = vst.msk [vmem:[#allocation7] sm:$0xff] %vm294_vm14, %v290_v10 }
 0x1ce   :  { %391 = shalt.err (!%p388_p6)
}
 0x1cf   :  { %s392_s10 = scalar_lea.hbm %s534_s2, 128 }
 0x1d0   :  { %p393_p7 = scmp.ne.s32.totalorder %s534_s2, %s392_s10  ;;  %p396_p8 = scmp.lt.u32.totalorder %s392_s10, %s534_s2 }
 0x1d2   :  { %p398_p9 = pnand %p396_p8, %p393_p7 }
 0x1d4   :  { %401 = shalt.err (!%p398_p9)
}
 0x1d5   :  { %305 = dma.vmem_to_hbm [thread:$0]  %s303_s6, 128, %s534_s2, [#allocation4]  }
 0x1d6   :  { %406 = dma.done.wait [#allocation4], 128  }
 0x1d7   :  { %407 = vsyncadd [#allocation4], 4294967168 }
 0x1d8   :  { %309 = vsyncpa [#allocation3], 1 }
 0x1d9   :  { %310 = vsyncpa [#allocation6], 1 }
 0x1da   :  { %311 = vsyncpa [#allocation4], 1 }

</bundles_post_ra>
